<compile_context>
chip_gen: v7x
topology: tpu7x:2x2x1
jax: 0.10.0
libtpu: 0.0.40
codegen_flags: <defaults>
</compile_context>

<pallas_src>
import math
import functools

import jax
import jax.numpy as jnp
from jax.experimental import pallas as pl
from jax.experimental.pallas import tpu as pltpu

LN_EPS = 1e-12
_INV_SQRT2 = 1.0 / math.sqrt(2.0)


# ---------------------------------------------------------------------------
# Kernel A: Linear1 + GeLU(erf) + BertLayerNorm  ->  normed (bf16)
# ---------------------------------------------------------------------------
def _hidden_kernel(x_ref, w1_ref, pbg_ref, n_ref):
    # x:   [Bp, H]   bf16
    # w1:  [H, 2H]   bf16
    # pbg: [3, 2H]   f32   rows: 0 = b1, 1 = gamma, 2 = beta
    # n:   [Bp, 2H]  bf16
    h = jnp.dot(x_ref[...], w1_ref[...], preferred_element_type=jnp.float32)
    h = h + pbg_ref[0:1, :]

    # GeLU (exact erf form, matching lxrt GeLU: x * 0.5 * (1 + erf(x / sqrt(2))))
    h = h * 0.5 * (1.0 + jax.lax.erf(h * _INV_SQRT2))

    # BertLayerNorm over last dim, eps = 1e-12, biased variance, centered two-pass
    # (matches torch.nn.LayerNorm numerics; variance is provably >= 0).
    mean = jnp.mean(h, axis=-1, keepdims=True)
    c = h - mean
    var = jnp.mean(c * c, axis=-1, keepdims=True)
    normed = c * jax.lax.rsqrt(var + LN_EPS)
    normed = normed * pbg_ref[1:2, :] + pbg_ref[2:3, :]

    n_ref[...] = normed.astype(n_ref.dtype)


# ---------------------------------------------------------------------------
# Kernel B: answer-dim tiled Linear2 (lane-dense output)
# ---------------------------------------------------------------------------
def _answer_tile_kernel(n_ref, w2_ref, b2_ref, o_ref):
    # n:  [Bp, 2H]  bf16   (pinned across all answer tiles)
    # w2: [2H, TN]  bf16   (answer-dim tile j)
    # b2: [1, TN]   f32    (answer-dim tile j)
    # o:  [Bp, TN]  f32    (answer-dim tile j)
    o_ref[...] = (
        jnp.dot(n_ref[...], w2_ref[...], preferred_element_type=jnp.float32)
        + b2_ref[...]
    ).astype(o_ref.dtype)


def _round_up(x, m):
    return -(-x // m) * m


def _clamp_vmem(nbytes):
    return int(min(max(int(1.5 * nbytes) + (2 << 20), 8 << 20), 40 << 20))


@functools.partial(jax.jit, static_argnames=("tn",))
def logit_fc_pallas(pooled, w1, b1, gamma, beta, w2, b2, *, tn=1024):
    B, H = pooled.shape
    H2 = w1.shape[1]
    A = w2.shape[1]

    # Batch padded to a multiple of 16 (bf16 sublane packing); answer dim padded lane-dense.
    B_pad = max(16, _round_up(B, 16))
    A_128 = _round_up(A, 128)

    # Answer-dim tiling: prefer an even tile count >= 2 (balanced across v7x's 2 TCs),
    # then shrink TN to the smallest 128-multiple that still covers A (min zero-pad waste).
    TN = min(tn, A_128)
    n_tiles = -(-A_128 // TN)
    if n_tiles > 1 and n_tiles % 2 == 1:
        n_tiles += 1
    TN = _round_up(-(-A_128 // n_tiles), 128)
    A_pad = TN * n_tiles

    x = pooled
    if B_pad != B:
        x = jnp.pad(x, ((0, B_pad - B), (0, 0)))
    x = x.astype(jnp.bfloat16)
    w1b = w1.astype(jnp.bfloat16)

    # b1 / gamma / beta packed into a single [3, H2] f32 block.
    pbg = jnp.stack(
        [b1.astype(jnp.float32), gamma.astype(jnp.float32), beta.astype(jnp.float32)],
        axis=0,
    )

    w2p = w2 if A_pad == A else jnp.pad(w2, ((0, 0), (0, A_pad - A)))
    b2p = b2 if A_pad == A else jnp.pad(b2, ((0, A_pad - A),))
    w2b = w2p.astype(jnp.bfloat16)
    b2r = b2p.reshape(1, A_pad).astype(jnp.float32)

    # ---- Kernel A: hidden stage, computed exactly once ----
    a_bytes = 2 * (B_pad * H * 2 + H * H2 * 2 + 8 * H2 * 4 + B_pad * H2 * 2) + 2 * (B_pad * H2 * 4)
    normed = pl.pallas_call(
        _hidden_kernel,
        out_shape=jax.ShapeDtypeStruct((B_pad, H2), jnp.bfloat16),
        grid_spec=pltpu.PrefetchScalarGridSpec(
            num_scalar_prefetch=0,
            grid=(1,),
            in_specs=[
                pl.BlockSpec((B_pad, H), lambda i: (0, 0)),   # x
                pl.BlockSpec((H, H2), lambda i: (0, 0)),      # w1
                pl.BlockSpec((3, H2), lambda i: (0, 0)),      # packed b1/gamma/beta
            ],
            out_specs=pl.BlockSpec((B_pad, H2), lambda i: (0, 0)),
        ),
        compiler_params=pltpu.CompilerParams(
            dimension_semantics=("arbitrary",),
            vmem_limit_bytes=_clamp_vmem(a_bytes),
        ),
    )(x, w1b, pbg)

    # ---- Kernel B: answer-dim tiled Linear2 ----
    # Budget: 2 buffers for every block (pinned normed included) + headroom.
    b_bytes = 2 * (B_pad * H2 * 2 + H2 * TN * 2 + 8 * TN * 4 + B_pad * TN * 4)
    out = pl.pallas_call(
        _answer_tile_kernel,
        out_shape=jax.ShapeDtypeStruct((B_pad, A_pad), jnp.float32),
        grid_spec=pltpu.PrefetchScalarGridSpec(
            num_scalar_prefetch=0,
            grid=(n_tiles,),
            in_specs=[
                pl.BlockSpec((B_pad, H2), lambda j: (0, 0)),  # normed (pinned)
                pl.BlockSpec((H2, TN), lambda j: (0, j)),     # w2 tile
                pl.BlockSpec((1, TN), lambda j: (0, j)),      # b2 tile
            ],
            out_specs=pl.BlockSpec((B_pad, TN), lambda j: (0, j)),
        ),
        compiler_params=pltpu.CompilerParams(
            dimension_semantics=("parallel",),
            vmem_limit_bytes=_clamp_vmem(b_bytes),
        ),
    )(normed, w2b, b2r)

    return out[:B, :A]


def logit_fc_reference(pooled, w1, b1, gamma, beta, w2, b2, matmul_dtype=jnp.float32):
    """Pure-JAX reference. matmul_dtype=bf16 emulates the kernel's mixed-precision matmuls."""
    h = jnp.dot(pooled.astype(matmul_dtype), w1.astype(matmul_dtype),
                preferred_element_type=jnp.float32) + b1
    h = h * 0.5 * (1.0 + jax.lax.erf(h * _INV_SQRT2))
    mean = jnp.mean(h, axis=-1, keepdims=True)
    var = jnp.mean((h - mean) ** 2, axis=-1, keepdims=True)
    normed = (h - mean) / jnp.sqrt(var + LN_EPS) * gamma + beta
    return jnp.dot(normed.astype(matmul_dtype), w2.astype(matmul_dtype),
                   preferred_element_type=jnp.float32) + b2


class CIBVQAModelV2Pallas:
    """Pallas port of CIBVQAModelV2's forward (inference path)."""

    def __init__(self, key, hid_dim=128, num_answers=8):
        self.hid_dim = hid_dim
        k1, k2 = jax.random.split(key, 2)
        # init_bert_weights: Linear weights ~ N(0, 0.02), biases 0; LayerNorm gamma=1, beta=0.
        self.w1 = 0.02 * jax.random.normal(k1, (hid_dim, hid_dim * 2), jnp.float32)
        self.b1 = jnp.zeros((hid_dim * 2,), jnp.float32)
        self.gamma = jnp.ones((hid_dim * 2,), jnp.float32)
        self.beta = jnp.zeros((hid_dim * 2,), jnp.float32)
        self.w2 = 0.02 * jax.random.normal(k2, (hid_dim * 2, num_answers), jnp.float32)
        self.b2 = jnp.zeros((num_answers,), jnp.float32)

    def forward(self, pooled_output):
        # TODO(synk): the full LXMERT cross-modal encoder (lxrt_encoder) and the training-only CIB
        # losses (CLUB / MVMIEstimator + loss.backward()) are external / training-only and have no
        # Pallas equivalent here; this wrapper consumes pooled_output and implements logit_fc.
        outputs = {"pooled_output": pooled_output}
        outputs["logit"] = logit_fc_pallas(
            pooled_output, self.w1, self.b1, self.gamma, self.beta, self.w2, self.b2
        )
        return outputs


if __name__ == "__main__":
    key = jax.random.PRNGKey(0)
    k_model, k_pooled = jax.random.split(key)

    B, H, A = 8, 128, 8
    model = CIBVQAModelV2Pallas(k_model, hid_dim=H, num_answers=A)

    # Stub encoder output (deterministic), standing in for lxrt_encoder(...)['pooled_output'].
    pooled = jax.random.normal(k_pooled, (B, H), jnp.float32)

    out = model.forward(pooled)
    logits = jax.block_until_ready(out["logit"])
    assert logits.shape == (B, A)

    # Tight check against a reference using the same bf16-matmul / f32-accumulate numerics.
    ref_bf16 = logit_fc_reference(
        pooled, model.w1, model.b1, model.gamma, model.beta, model.w2, model.b2,
        matmul_dtype=jnp.bfloat16,
    )
    assert jnp.allclose(logits, ref_bf16, atol=5e-3, rtol=5e-3)

    # Loose check against the full-f32 reference (bf16 matmul inputs => ~1% relative error budget).
    ref_f32 = logit_fc_reference(
        pooled, model.w1, model.b1, model.gamma, model.beta, model.w2, model.b2,
        matmul_dtype=jnp.float32,
    )
    assert jnp.allclose(logits, ref_f32, atol=5e-2, rtol=5e-2)

    print("KERNEL_OK")
</pallas_src>

<mosaic_0001>
module attributes {stable_mosaic.version = 11 : i64} {
  func.func @_hidden_kernel(%arg0: i32, %arg1: memref<16x128xbf16, #tpu.memory_space<vmem>>, %arg2: memref<128x256xbf16, #tpu.memory_space<vmem>>, %arg3: memref<3x256xf32, #tpu.memory_space<vmem>>, %arg4: memref<16x256xbf16, #tpu.memory_space<vmem>>) attributes {dimension_semantics = [#tpu.dimension_semantics<arbitrary>], iteration_bounds = array<i64: 1>, scalar_prefetch = 0 : i64, scratch_operands = 0 : i64, tpu.core_type = #tpu.core_type<tc>, window_params = [{pipeline_mode = #tpu.pipeline_mode<synchronous>, transform_indices = @transform_0, window_bounds = array<i64: 16, 128>}, {pipeline_mode = #tpu.pipeline_mode<synchronous>, transform_indices = @transform_1, window_bounds = array<i64: 128, 256>}, {pipeline_mode = #tpu.pipeline_mode<synchronous>, transform_indices = @transform_2, window_bounds = array<i64: 3, 256>}, {pipeline_mode = #tpu.pipeline_mode<synchronous>, transform_indices = @transform_3, window_bounds = array<i64: 16, 256>}]} {
    %c0 = arith.constant 0 : index
    %c0_0 = arith.constant 0 : index
    %0 = vector.load %arg1[%c0, %c0_0] : memref<16x128xbf16, #tpu.memory_space<vmem>>, vector<16x128xbf16>
    %c0_1 = arith.constant 0 : index
    %c0_2 = arith.constant 0 : index
    %1 = vector.load %arg2[%c0_1, %c0_2] : memref<128x256xbf16, #tpu.memory_space<vmem>>, vector<128x256xbf16>
    %cst = arith.constant dense<0.000000e+00> : vector<16x256xf32>
    %2 = tpu.matmul %0, %1, %cst {dimension_numbers = #tpu.dot_dimension_numbers<[1], [0], [0], [1], [0, 0, 1, 1], [], []>} : vector<16x128xbf16>, vector<128x256xbf16>, vector<16x256xf32> -> vector<16x256xf32>
    %c0_3 = arith.constant 0 : index
    %c0_4 = arith.constant 0 : index
    %3 = vector.load %arg3[%c0_3, %c0_4] : memref<3x256xf32, #tpu.memory_space<vmem>>, vector<1x256xf32>
    %4 = vector.broadcast %3 : vector<1x256xf32> to vector<16x256xf32>
    %5 = arith.addf %2, %4 : vector<16x256xf32>
    %cst_5 = arith.constant 5.000000e-01 : f32
    %6 = vector.broadcast %cst_5 : f32 to vector<16x256xf32>
    %7 = arith.mulf %5, %6 : vector<16x256xf32>
    %cst_6 = arith.constant 0.707106769 : f32
    %8 = vector.broadcast %cst_6 : f32 to vector<16x256xf32>
    %9 = arith.mulf %5, %8 : vector<16x256xf32>
    %10 = math.erf %9 : vector<16x256xf32>
    %cst_7 = arith.constant 1.000000e+00 : f32
    %11 = vector.broadcast %cst_7 : f32 to vector<16x256xf32>
    %12 = arith.addf %11, %10 : vector<16x256xf32>
    %13 = arith.mulf %7, %12 : vector<16x256xf32>
    %cst_8 = arith.constant dense<0.000000e+00> : vector<16xf32>
    %14 = vector.multi_reduction <add>, %13, %cst_8 [1] : vector<16x256xf32> to vector<16xf32>
    %15 = vector.shape_cast %14 : vector<16xf32> to vector<16x1xf32>
    %cst_9 = arith.constant 2.560000e+02 : f32
    %16 = vector.broadcast %cst_9 : f32 to vector<16x1xf32>
    %17 = arith.divf %15, %16 : vector<16x1xf32>
    %18 = vector.broadcast %17 : vector<16x1xf32> to vector<16x256xf32>
    %19 = arith.subf %13, %18 : vector<16x256xf32>
    %20 = arith.mulf %19, %19 : vector<16x256xf32>
    %cst_10 = arith.constant dense<0.000000e+00> : vector<16xf32>
    %21 = vector.multi_reduction <add>, %20, %cst_10 [1] : vector<16x256xf32> to vector<16xf32>
    %22 = vector.shape_cast %21 : vector<16xf32> to vector<16x1xf32>
    %cst_11 = arith.constant 2.560000e+02 : f32
    %23 = vector.broadcast %cst_11 : f32 to vector<16x1xf32>
    %24 = arith.divf %22, %23 : vector<16x1xf32>
    %cst_12 = arith.constant 9.99999996E-13 : f32
    %25 = vector.broadcast %cst_12 : f32 to vector<16x1xf32>
    %26 = arith.addf %24, %25 : vector<16x1xf32>
    %27 = math.rsqrt %26 : vector<16x1xf32>
    %28 = vector.broadcast %27 : vector<16x1xf32> to vector<16x256xf32>
    %29 = arith.mulf %19, %28 : vector<16x256xf32>
    %c1 = arith.constant 1 : index
    %c0_13 = arith.constant 0 : index
    %30 = vector.load %arg3[%c1, %c0_13] : memref<3x256xf32, #tpu.memory_space<vmem>>, vector<1x256xf32>
    %31 = vector.broadcast %30 : vector<1x256xf32> to vector<16x256xf32>
    %32 = arith.mulf %29, %31 : vector<16x256xf32>
    %c2 = arith.constant 2 : index
    %c0_14 = arith.constant 0 : index
    %33 = vector.load %arg3[%c2, %c0_14] : memref<3x256xf32, #tpu.memory_space<vmem>>, vector<1x256xf32>
    %34 = vector.broadcast %33 : vector<1x256xf32> to vector<16x256xf32>
    %35 = arith.addf %32, %34 : vector<16x256xf32>
    %36 = arith.truncf %35 : vector<16x256xf32> to vector<16x256xbf16>
    %c0_15 = arith.constant 0 : index
    %c0_16 = arith.constant 0 : index
    %37 = vector.load %arg4[%c0_15, %c0_16] : memref<16x256xbf16, #tpu.memory_space<vmem>>, vector<16x256xbf16>
    tpu.vector_store %arg4[%c0_15, %c0_16], %36 {strides = array<i32>} : memref<16x256xbf16, #tpu.memory_space<vmem>>, vector<16x256xbf16>,
    return
  }
  func.func @transform_0(%arg0: i32) -> (i32, i32) {
    %c0_i32 = arith.constant 0 : i32
    %c0_i32_0 = arith.constant 0 : i32
    %c0_i32_1 = arith.constant 0 : i32
    return %c0_i32, %c0_i32_0 : i32, i32
  }
  func.func @transform_1(%arg0: i32) -> (i32, i32) {
    %c0_i32 = arith.constant 0 : i32
    %c0_i32_0 = arith.constant 0 : i32
    %c0_i32_1 = arith.constant 0 : i32
    return %c0_i32, %c0_i32_0 : i32, i32
  }
  func.func @transform_2(%arg0: i32) -> (i32, i32) {
    %c0_i32 = arith.constant 0 : i32
    %c0_i32_0 = arith.constant 0 : i32
    %c0_i32_1 = arith.constant 0 : i32
    return %c0_i32, %c0_i32_0 : i32, i32
  }
  func.func @transform_3(%arg0: i32) -> (i32, i32) {
    %c0_i32 = arith.constant 0 : i32
    %c0_i32_0 = arith.constant 0 : i32
    %c0_i32_1 = arith.constant 0 : i32
    return %c0_i32, %c0_i32_0 : i32, i32
  }
}

module attributes {stable_mosaic.version = 11 : i64} {
  func.func @_answer_tile_kernel(%arg0: i32, %arg1: memref<16x256xbf16, #tpu.memory_space<vmem>>, %arg2: memref<256x128xbf16, #tpu.memory_space<vmem>>, %arg3: memref<1x128xf32, #tpu.memory_space<vmem>>, %arg4: memref<16x128xf32, #tpu.memory_space<vmem>>) attributes {dimension_semantics = [#tpu.dimension_semantics<parallel>], iteration_bounds = array<i64: 1>, scalar_prefetch = 0 : i64, scratch_operands = 0 : i64, tpu.core_type = #tpu.core_type<tc>, window_params = [{pipeline_mode = #tpu.pipeline_mode<synchronous>, transform_indices = @transform_0, window_bounds = array<i64: 16, 256>}, {transform_indices = @transform_1, window_bounds = array<i64: 256, 128>}, {transform_indices = @transform_2, window_bounds = array<i64: 1, 128>}, {transform_indices = @transform_3, window_bounds = array<i64: 16, 128>}]} {
    %c0 = arith.constant 0 : index
    %c0_0 = arith.constant 0 : index
    %0 = vector.load %arg1[%c0, %c0_0] : memref<16x256xbf16, #tpu.memory_space<vmem>>, vector<16x256xbf16>
    %c0_1 = arith.constant 0 : index
    %c0_2 = arith.constant 0 : index
    %1 = vector.load %arg2[%c0_1, %c0_2] : memref<256x128xbf16, #tpu.memory_space<vmem>>, vector<256x128xbf16>
    %cst = arith.constant dense<0.000000e+00> : vector<16x128xf32>
    %2 = tpu.matmul %0, %1, %cst {dimension_numbers = #tpu.dot_dimension_numbers<[1], [0], [0], [1], [0, 0, 1, 1], [], []>} : vector<16x256xbf16>, vector<256x128xbf16>, vector<16x128xf32> -> vector<16x128xf32>
    %c0_3 = arith.constant 0 : index
    %c0_4 = arith.constant 0 : index
    %3 = vector.load %arg3[%c0_3, %c0_4] : memref<1x128xf32, #tpu.memory_space<vmem>>, vector<1x128xf32>
    %4 = vector.broadcast %3 : vector<1x128xf32> to vector<16x128xf32>
    %5 = arith.addf %2, %4 : vector<16x128xf32>
    %c0_5 = arith.constant 0 : index
    %c0_6 = arith.constant 0 : index
    %6 = vector.load %arg4[%c0_5, %c0_6] : memref<16x128xf32, #tpu.memory_space<vmem>>, vector<16x128xf32>
    tpu.vector_store %arg4[%c0_5, %c0_6], %5 {strides = array<i32>} : memref<16x128xf32, #tpu.memory_space<vmem>>, vector<16x128xf32>,
    return
  }
  func.func @transform_0(%arg0: i32) -> (i32, i32) {
    %c0_i32 = arith.constant 0 : i32
    %c0_i32_0 = arith.constant 0 : i32
    %c0_i32_1 = arith.constant 0 : i32
    return %c0_i32, %c0_i32_0 : i32, i32
  }
  func.func @transform_1(%arg0: i32) -> (i32, i32) {
    %c0_i32 = arith.constant 0 : i32
    %c0_i32_0 = arith.constant 0 : i32
    return %c0_i32, %arg0 : i32, i32
  }
  func.func @transform_2(%arg0: i32) -> (i32, i32) {
    %c0_i32 = arith.constant 0 : i32
    %c0_i32_0 = arith.constant 0 : i32
    return %c0_i32, %arg0 : i32, i32
  }
  func.func @transform_3(%arg0: i32) -> (i32, i32) {
    %c0_i32 = arith.constant 0 : i32
    %c0_i32_0 = arith.constant 0 : i32
    return %c0_i32, %arg0 : i32, i32
  }
}

</mosaic_0001>

<bundles_post_ra>
// kernel: logit_fc_pallas.2
= control target key start
LH: loop header
LB: loop body
LE: loop exit
PB: predicated region body
PF: predicated region fallthrough
CT: control target
= control target key end

     0   :  { %v340_v1 = vmov 0   ;;  %v35_v18 = vlaneseq  ;;  %s437_s1 = inlined_call_operand.vmem [shape: bf16[128,256], index: 1, kind: input, shape index: {}]   ;;  %s438_s0 = inlined_call_operand.vmem [shape: bf16[16,128], index: 0, kind: input, shape index: {}]   ;;  %s439_s2 = inlined_call_operand.vmem [shape: f32[3,256], index: 2, kind: input, shape index: {}]   ;;  %s440_s3 = inlined_call_operand.vmem [shape: bf16[16,256], index: 3, kind: output, shape index: {}]  }
   0x1   :  { %v303_v0 = vld [vmem:[%s437_s1 + $0x4] ss:$8 sps:$4 sm:$0xff]   ;;  %163 = vmatprep.mubr.bf16.mxu0 %v340_v1  ;;  %v305_v2 = vld [vmem:[%s437_s1] ss:$8 sps:$4 sm:$0xff]   ;;  %v306_v3 = vld [vmem:[%s437_s1 + $0x14] ss:$8 sps:$4 sm:$0xff]  }
   0x2   :  { %131 = vmatprep.subr.bf16.mxu0 %v303_v0  ;;  %v308_v4 = vld [vmem:[%s437_s1 + $0x10] ss:$8 sps:$4 sm:$0xff]   ;;  %v309_v5 = vld [vmem:[%s437_s1 + $0x24] ss:$8 sps:$4 sm:$0xff]   ;;  %v311_v6 = vld [vmem:[%s437_s1 + $0x20] ss:$8 sps:$4 sm:$0xff]  }
   0x3   :  { %132 = vmatpush1.bf16.msra.mxu0 %v305_v2  ;;  %v312_v7 = vld [vmem:[%s437_s1 + $0x34] ss:$8 sps:$4 sm:$0xff]   ;;  %v314_v8 = vld [vmem:[%s437_s1 + $0x30] ss:$8 sps:$4 sm:$0xff]   ;;  %v315_v9 = vld [vmem:[%s437_s1 + $0x44] ss:$8 sps:$4 sm:$0xff]  }
   0x4   :  { %133 = vmatprep.subr.bf16.mxu0 %v306_v3  ;;  %v317_v10 = vld [vmem:[%s437_s1 + $0x40] ss:$8 sps:$4 sm:$0xff]   ;;  %v318_v11 = vld [vmem:[%s437_s1 + $0x54] ss:$8 sps:$4 sm:$0xff]   ;;  %v320_v12 = vld [vmem:[%s437_s1 + $0x50] ss:$8 sps:$4 sm:$0xff]  }
   0x5   :  { %v321_v13 = vld [vmem:[%s437_s1 + $0x64] ss:$8 sps:$4 sm:$0xff]   ;;  %v323_v14 = vld [vmem:[%s437_s1 + $0x60] ss:$8 sps:$4 sm:$0xff]   ;;  %v324_v15 = vld [vmem:[%s437_s1 + $0x74] ss:$8 sps:$4 sm:$0xff]  }
   0x6   :  { %v326_v16 = vld [vmem:[%s437_s1 + $0x70] ss:$8 sps:$4 sm:$0xff]   ;;  %v327_v17 = vld [vmem:[%s438_s0] sm:$0xff]   ;;  %v36_v19 = vshrl.u32 %v35_v18, 7 }
   0x7   :  { %134 = vmatpush1.bf16.msra.mxu0 %v308_v4  ;;  %v33_v21 = vld [vmem:[%s439_s2] ss:$4 sm:$0x3] }
   0x8   :  { %135 = vmatprep.subr.bf16.mxu0 %v309_v5  ;;  %v412_v20 = vsub.s32 0, %v36_v19  ;;  %v417_v22 = vsub.s32 1, %v36_v19 }
   0xa   :  { %v38_v23 = vrot.slane %v33_v21, %v412_v20  ;;  %v42_v24 = vrot.slane %v33_v21, %v417_v22 }
   0xb   :  { %136 = vmatpush1.bf16.msra.mxu0 %v311_v6 }
   0xc   :  { %137 = vmatprep.subr.bf16.mxu0 %v312_v7 }
   0xf   :  { %138 = vmatpush1.bf16.msra.mxu0 %v314_v8 }
  0x10   :  { %139 = vmatprep.subr.bf16.mxu0 %v315_v9 }
  0x13   :  { %140 = vmatpush1.bf16.msra.mxu0 %v317_v10 }
  0x14   :  { %141 = vmatprep.subr.bf16.mxu0 %v318_v11  ;;  %v296_v11 = vld [vmem:[%s439_s2 + $0x1] ss:$4 sm:$0x3] }
  0x17   :  { %142 = vmatpush1.bf16.msra.mxu0 %v320_v12  ;;  %v297_v12 = vld [vmem:[%s439_s2 + $0x2] ss:$4 sm:$0x3] }
  0x18   :  { %143 = vmatprep.subr.bf16.mxu0 %v321_v13  ;;  %v233_v13 = vrot.slane %v296_v11, %v412_v20 }
  0x1b   :  { %144 = vmatpush1.bf16.msra.mxu0 %v323_v14  ;;  %v237_v14 = vrot.slane %v296_v11, %v417_v22 }
  0x1c   :  { %145 = vmatprep.subr.bf16.mxu0 %v324_v15 }
  0x1f   :  { %146 = vmatpush1.bf16.msra.mxu0 %v326_v16  ;;  %v250_v16 = vrot.slane %v297_v12, %v412_v20 }
  0x22   :  { %164 = vmatmul.mubr.bf16.vlgmr.msra.gmra.mrb[0].mxu0 %v327_v17  ;;  %v254_v17 = vrot.slane %v297_v12, %v417_v22 }
  0xf5   :  { %v165_v25 = vpop.f32.mrb[0].mxu0 }
  0xf6   :  { %v166_v26 = vadd.f32 %v165_v25, %v38_v23  ;;  %v167_v27 = vpop.f32.mrb[1].mxu0 }
  0xf7   :  { %v168_v28 = vadd.f32 %v167_v27, %v42_v24  ;;  %v169_v29 = vpop.f32.mrb[2].mxu0 }
  0xf8   :  { %v178_v30 = vmul.f32 0.70710677, %v166_v26  ;;  %v170_v31 = vadd.f32 %v169_v29, %v38_v23  ;;  %v171_v32 = vpop.f32.mrb[3].mxu0  ;;  %v174_v39 = vmul.f32 0.5, %v166_v26 }
  0xf9   :  { %v179_v33 = vmul.f32 0.70710677, %v168_v28  ;;  %v172_v34 = vadd.f32 %v171_v32, %v42_v24  ;;  %v175_v42 = vmul.f32 0.5, %v168_v28 }
  0xfa   :  { %328 = verf.f32 %v178_v30  ;;  %v180_v35 = vmul.f32 0.70710677, %v170_v31  ;;  %v176_v47 = vmul.f32 0.5, %v170_v31 }
  0xfb   :  { %330 = verf.f32 %v179_v33  ;;  %v181_v36 = vmul.f32 0.70710677, %v172_v34  ;;  %v177_v48 = vmul.f32 0.5, %v172_v34 }
  0xfc   :  { %332 = verf.f32 %v180_v35 }
  0xfd   :  { %334 = verf.f32 %v181_v36 }
 0x104   :  { %v329_v37 = vpop.eup %328 }
 0x105   :  { %v331_v38 = vpop.eup %330  ;;  %v186_v40 = vadd.f32 1.0, %v329_v37 }
 0x106   :  { %v333_v41 = vpop.eup %332  ;;  %v187_v43 = vadd.f32 1.0, %v331_v38 }
 0x107   :  { %v335_v44 = vpop.eup %334  ;;  %v190_v45 = vmul.f32 %v186_v40, %v174_v39  ;;  %v188_v46 = vadd.f32 1.0, %v333_v41 }
 0x108   :  { %v191_v49 = vmul.f32 %v187_v43, %v175_v42  ;;  %v189_v50 = vadd.f32 1.0, %v335_v44 }
 0x109   :  { %v192_v52 = vmul.f32 %v188_v46, %v176_v47 }
 0x10a   :  { %v194_v51 = vadd.f32 %v191_v49, %v190_v45  ;;  %v193_v53 = vmul.f32 %v189_v50, %v177_v48 }
 0x10c   :  { %195 = vadd.xlane.f32.xlu0 %v194_v51  ;;  %v197_v54 = vadd.f32 %v193_v53, %v192_v52 }
 0x110   :  { %198 = vadd.xlane.f32.xlu0 %v197_v54 }
 0x199   :  { %v196_v55 = vpop.xlane.xlu0 %195 }
 0x19a   :  { %v201_v56 = vmul.f32 0.00390625, %v196_v55 }
 0x19c   :  { %v203_v57 = vsub.f32 %v190_v45, %v201_v56  ;;  %v204_v58 = vsub.f32 %v191_v49, %v201_v56 }
 0x19d   :  { %v199_v59 = vpop.xlane.xlu0 %198 }
 0x19e   :  { %v202_v60 = vmul.f32 0.00390625, %v199_v59  ;;  %v207_v61 = vmul.f32 %v203_v57, %v203_v57  ;;  %v208_v62 = vmul.f32 %v204_v58, %v204_v58 }
 0x1a0   :  { %v205_v63 = vsub.f32 %v192_v52, %v202_v60  ;;  %v206_v0 = vsub.f32 %v193_v53, %v202_v60  ;;  %v211_v1 = vadd.f32 %v208_v62, %v207_v61 }
 0x1a2   :  { %212 = vadd.xlane.f32.xlu1 %v211_v1  ;;  %v209_v2 = vmul.f32 %v205_v63, %v205_v63  ;;  %v210_v3 = vmul.f32 %v206_v0, %v206_v0 }
 0x1a4   :  { %v214_v4 = vadd.f32 %v210_v3, %v209_v2 }
 0x1a6   :  { %215 = vadd.xlane.f32.xlu1 %v214_v4 }
 0x22f   :  { %v213_v5 = vpop.xlane.xlu1 %212 }
 0x230   :  { %v217_v6 = vmul.f32 0.00390625, %v213_v5 }
 0x232   :  { %v219_v7 = vadd.f32 1e-12, %v217_v6 }
 0x233   :  { %v216_v8 = vpop.xlane.xlu1 %215 }
 0x234   :  { %336 = vrsqrt.f32 %v219_v7  ;;  %v218_v9 = vmul.f32 0.00390625, %v216_v8 }
 0x236   :  { %v220_v10 = vadd.f32 1e-12, %v218_v9 }
 0x238   :  { %338 = vrsqrt.f32 %v220_v10 }
 0x23e   :  { %v337_v15 = vpop.eup %336 }
 0x23f   :  { %v223_v18 = vmul.f32 %v337_v15, %v203_v57  ;;  %v224_v19 = vmul.f32 %v337_v15, %v204_v58 }
 0x241   :  { %v240_v21 = vmul.f32 %v233_v13, %v223_v18  ;;  %v241_v23 = vmul.f32 %v237_v14, %v224_v19 }
 0x242   :  { %v339_v24 = vpop.eup %338 }
 0x243   :  { %v257_v25 = vadd.f32 %v250_v16, %v240_v21  ;;  %v258_v26 = vadd.f32 %v254_v17, %v241_v23  ;;  %v225_v27 = vmul.f32 %v339_v24, %v205_v63  ;;  %v226_v28 = vmul.f32 %v339_v24, %v206_v0 }
 0x245   :  { %v300_v29 = vpack.c.bf16 %v258_v26, %v257_v25  ;;  %v242_v30 = vmul.f32 %v233_v13, %v225_v27  ;;  %v243_v31 = vmul.f32 %v237_v14, %v226_v28 }
 0x247   :  { %273 = vst [vmem:[%s440_s3] sm:$0xff] %v300_v29  ;;  %v259_v32 = vadd.f32 %v250_v16, %v242_v30  ;;  %v260_v20 = vadd.f32 %v254_v17, %v243_v31 }
 0x249   :  { %v301_v33 = vpack.c.bf16 %v260_v20, %v259_v32 }
 0x24b   :  { %274 = vst [vmem:[%s440_s3 + $0x8] sm:$0xff] %v301_v33 }

// kernel: logit_fc_pallas.3
= control target key start
LH: loop header
LB: loop body
LE: loop exit
PB: predicated region body
PF: predicated region fallthrough
CT: control target
= control target key end

     0   :  { %s352_s1 = inlined_call_operand.vmem [shape: bf16[256,128], index: 1, kind: input, shape index: {}]   ;;  %s353_s0 = inlined_call_operand.vmem [shape: bf16[16,256], index: 0, kind: input, shape index: {}]   ;;  %s354_s2 = inlined_call_operand.vmem [shape: f32[1,128], index: 2, kind: input, shape index: {}]   ;;  %s355_s3 = inlined_call_operand.vmem [shape: f32[16,128], index: 3, kind: output, shape index: {}]  }
   0x1   :  { %v250_v0 = vld [vmem:[%s352_s1 + $0x40] sm:$0xff]   ;;  %v252_v2 = vld [vmem:[%s352_s1 + $0x48] sm:$0xff]   ;;  %v254_v4 = vld [vmem:[%s352_s1 + $0x50] sm:$0xff]  }
   0x2   :  { %v251_v1 = vld [vmem:[%s352_s1] sm:$0xff]   ;;  %228 = vmatprep.subr.bf16.mxu0 %v250_v0  ;;  %v253_v3 = vld [vmem:[%s352_s1 + $0x8] sm:$0xff]   ;;  %v255_v5 = vld [vmem:[%s352_s1 + $0x10] sm:$0xff]  }
   0x3   :  { %229 = vmatpush3.bf16.msra.mxu0 %v251_v1  ;;  %v256_v6 = vld [vmem:[%s352_s1 + $0x58] sm:$0xff]   ;;  %v258_v8 = vld [vmem:[%s352_s1 + $0x60] sm:$0xff]   ;;  %v260_v10 = vld [vmem:[%s352_s1 + $0x68] sm:$0xff]  }
   0x4   :  { %230 = vmatprep.subr.bf16.mxu0 %v252_v2  ;;  %v257_v7 = vld [vmem:[%s352_s1 + $0x18] sm:$0xff]   ;;  %v259_v9 = vld [vmem:[%s352_s1 + $0x20] sm:$0xff]   ;;  %v261_v12 = vld [vmem:[%s352_s1 + $0x28] sm:$0xff]  }
   0x5   :  { %v268_v11 = vld [vmem:[%s353_s0 + $0x4] ss:$8 sps:$4 sm:$0xff]   ;;  %v262_v13 = vld [vmem:[%s352_s1 + $0x70] sm:$0xff]   ;;  %v264_v15 = vld [vmem:[%s352_s1 + $0x78] sm:$0xff]  }
   0x6   :  { %194 = vmatprep.mubr.bf16.mxu0 %v268_v11  ;;  %v263_v14 = vld [vmem:[%s352_s1 + $0x30] sm:$0xff]   ;;  %v265_v16 = vld [vmem:[%s352_s1 + $0x38] sm:$0xff]   ;;  %v266_v17 = vld [vmem:[%s353_s0] ss:$8 sps:$4 sm:$0xff]  }
   0x7   :  { %231 = vmatpush3.bf16.msra.mxu0 %v253_v3  ;;  %v209_v19 = vld [vmem:[%s354_s2] ss:$0 sm:$0xff] }
   0x8   :  { %232 = vmatprep.subr.bf16.mxu0 %v254_v4 }
   0xb   :  { %233 = vmatpush3.bf16.msra.mxu0 %v255_v5 }
   0xc   :  { %234 = vmatprep.subr.bf16.mxu0 %v256_v6 }
   0xf   :  { %235 = vmatpush3.bf16.msra.mxu0 %v257_v7 }
  0x10   :  { %236 = vmatprep.subr.bf16.mxu0 %v258_v8 }
  0x13   :  { %237 = vmatpush3.bf16.msra.mxu0 %v259_v9 }
  0x14   :  { %238 = vmatprep.subr.bf16.mxu0 %v260_v10 }
  0x17   :  { %239 = vmatpush3.bf16.msra.mxu0 %v261_v12 }
  0x18   :  { %240 = vmatprep.subr.bf16.mxu0 %v262_v13 }
  0x1b   :  { %241 = vmatpush3.bf16.msra.mxu0 %v263_v14 }
  0x1c   :  { %242 = vmatprep.subr.bf16.mxu0 %v264_v15 }
  0x1f   :  { %243 = vmatpush3.bf16.msra.mxu0 %v265_v16 }
  0x22   :  { %195 = vmatmul.mubr.bf16.vlgmr.msra.gmra.mrb[0].mxu0 %v266_v17 }
  0xf5   :  { %v244_v18 = vpop.f32.mrb[0].mxu0 }
  0xf6   :  { %v245_v20 = vpop.f32.mrb[1].mxu0 }
  0xf7   :  { %v246_v21 = vadd.f32 %v245_v20, %v244_v18  ;;  %v247_v22 = vpop.f32.mrb[2].mxu0 }
  0xf8   :  { %v248_v23 = vpop.f32.mrb[3].mxu0 }
  0xf9   :  { %v197_v24 = vadd.f32 %v246_v21, %v209_v19  ;;  %v249_v25 = vadd.f32 %v248_v23, %v247_v22 }
  0xfb   :  { %203 = vst [vmem:[%s355_s3] sm:$0xff] %v197_v24  ;;  %v200_v26 = vadd.f32 %v249_v25, %v209_v19 }
  0xfd   :  { %204 = vst [vmem:[%s355_s3 + $0x8] sm:$0xff] %v200_v26 }

</bundles_post_ra>
